<compile_context>
chip_gen: v7x
topology: tpu7x:2x2x1
jax: 0.10.0
libtpu: 0.0.40
codegen_flags: <defaults>
</compile_context>

<pallas_src>
import jax
import jax.numpy as jnp
from jax.experimental import pallas as pl
from jax.experimental.pallas import tpu as pltpu


def _round_up(n, m):
    return ((n + m - 1) // m) * m


def mlp_softmax_kernel(x_ref, w1_ref, b1_ref, w2_ref, b2_ref, w3_ref, b3_ref, o_ref):
    x = x_ref[...]  # bf16 (tb, D)

    # Layer 1: Linear(D -> 128-padded 96) + ReLU   (bf16 operands, fp32 accumulate)
    h1 = jnp.dot(x, w1_ref[...], preferred_element_type=jnp.float32) + b1_ref[...]
    h1 = jnp.maximum(h1, 0.0)

    # Layer 2: Linear(128 -> 128-padded 48) + ReLU
    h2 = jnp.dot(h1.astype(jnp.bfloat16), w2_ref[...],
                 preferred_element_type=jnp.float32) + b2_ref[...]
    h2 = jnp.maximum(h2, 0.0)

    # Output layer: Linear(128 -> num_outcomes)
    logits = jnp.dot(h2.astype(jnp.bfloat16), w3_ref[...],
                     preferred_element_type=jnp.float32) + b3_ref[...]

    # Numerically stable softmax over dim=1.  Exact divide: rows sum to 1
    # within fp32 rounding (approx reciprocal was not tight enough downstream).
    m = jnp.max(logits, axis=1, keepdims=True)
    e = jnp.exp(logits - m)
    denom = jnp.sum(e, axis=1, keepdims=True)
    o_ref[...] = e / denom


def conversation_outcome_predictor(x, params, *, block_b=2048,
                                   vmem_limit_bytes=48 * 1024 * 1024):
    """x: (B, D) float array. params: lane-padded (w1,b1,w2,b2,w3,b3), (in, out) layout,
    weights bf16 / biases fp32 (see pad_params_for_tpu).

    block_b: max batch tile.  Large tiles (1024-4096) amortize per-grid-step
    overhead; the tile is clamped against the VMEM budget below and the grid
    keeps >= 2 steps when the batch allows (v7x 2-TC split).
    """
    w1, b1, w2, b2, w3, b3 = params
    B, D = x.shape
    H1 = w1.shape[1]
    H2 = w2.shape[1]
    O = w3.shape[1]

    # bf16 activations in HBM: halves the dominant B*D read stream (v5e/v6e).
    x = x.astype(jnp.bfloat16)

    # --- batch tile selection ---
    SUB = 16  # sublane granularity for packed bf16 rows
    tb = max(SUB, _round_up(min(block_b, B), SUB))
    # Keep >= 2 grid steps whenever possible so ("parallel",) can split the
    # batch across v7x's two TensorCores (no effect on v5e/v6e).
    if B > SUB:
        tb = min(tb, max(SUB, _round_up(pl.cdiv(B, 2), SUB)))
    # VMEM budget clamp: double-buffered x (bf16) + out (f32), resident weights
    # (double-buffered by the pipeline), and a few fp32 intermediates per row.
    weight_bytes = (D * H1 + H1 * H2 + H2 * O) * 2 + (H1 + H2 + O) * 4
    per_row_bytes = 2 * D * 2 + 2 * O * 4 + 6 * max(H1, H2, 128) * 4
    budget = int(vmem_limit_bytes * 0.75) - 2 * weight_bytes
    max_rows = max(SUB, (budget // max(per_row_bytes, 1)) // SUB * SUB)
    tb = min(tb, max_rows)

    n_blocks = pl.cdiv(B, tb)
    B_pad = n_blocks * tb
    if B_pad != B:
        # Zero-padded rows flow through bias-only logits -> finite softmax rows,
        # then are sliced off below; no NaN/Inf can enter the reductions.
        x = jnp.pad(x, ((0, B_pad - B), (0, 0)))

    flops = 2 * B_pad * (D * H1 + H1 * H2 + H2 * O)
    bytes_accessed = (2 * B_pad * D                      # x (bf16)
                      + 2 * (D * H1 + H1 * H2 + H2 * O)  # weights (bf16)
                      + 4 * (H1 + H2 + O)                # biases (f32)
                      + 4 * B_pad * O)                   # out (f32)

    out = pl.pallas_call(
        mlp_softmax_kernel,
        out_shape=jax.ShapeDtypeStruct((B_pad, O), jnp.float32),
        grid_spec=pltpu.PrefetchScalarGridSpec(
            num_scalar_prefetch=0,
            grid=(n_blocks,),
            in_specs=[
                pl.BlockSpec((tb, D), lambda i: (i, 0)),   # x: streamed per tile
                pl.BlockSpec((D, H1), lambda i: (0, 0)),   # weights/biases: VMEM-resident
                pl.BlockSpec((1, H1), lambda i: (0, 0)),
                pl.BlockSpec((H1, H2), lambda i: (0, 0)),
                pl.BlockSpec((1, H2), lambda i: (0, 0)),
                pl.BlockSpec((H2, O), lambda i: (0, 0)),
                pl.BlockSpec((1, O), lambda i: (0, 0)),
            ],
            out_specs=pl.BlockSpec((tb, O), lambda i: (i, 0)),
        ),
        compiler_params=pltpu.CompilerParams(
            dimension_semantics=("parallel",),
            vmem_limit_bytes=vmem_limit_bytes,
        ),
        cost_estimate=pl.CostEstimate(
            flops=flops, transcendentals=B_pad * O, bytes_accessed=bytes_accessed),
    )(x, w1, b1, w2, b2, w3, b3)
    return out[:B]


def init_params(key, input_size, hidden_sizes=(96, 48), num_outcomes=5):
    """Deterministic synthetic parameters (stored (in, out) for the kernel), fp32."""
    sizes = [input_size, *hidden_sizes, num_outcomes]
    params = []
    for i in range(len(sizes) - 1):
        fan_in, fan_out = sizes[i], sizes[i + 1]
        key, kw, kb = jax.random.split(key, 3)
        bound = 1.0 / jnp.sqrt(fan_in)
        w = jax.random.uniform(kw, (fan_in, fan_out), jnp.float32, -bound, bound)
        b = jax.random.uniform(kb, (1, fan_out), jnp.float32, -bound, bound)
        params.extend([w, b])
    return tuple(params)


def pad_params_for_tpu(params, lane=128):
    """Zero-pad hidden dims to a multiple of 128 lanes (padded lanes see zero
    weights + zero bias, ReLU(0)=0) and store weights bf16 for the MXU.
    Biases stay fp32 (added after the fp32-accumulated dot)."""
    w1, b1, w2, b2, w3, b3 = params

    def rup(n):
        return _round_up(n, lane)

    h1, h2 = w1.shape[1], w2.shape[1]
    h1p, h2p = rup(h1), rup(h2)
    w1p = jnp.pad(w1, ((0, 0), (0, h1p - h1))).astype(jnp.bfloat16)
    b1p = jnp.pad(b1, ((0, 0), (0, h1p - h1)))
    w2p = jnp.pad(w2, ((0, h1p - h1), (0, h2p - h2))).astype(jnp.bfloat16)
    b2p = jnp.pad(b2, ((0, 0), (0, h2p - h2)))
    w3p = jnp.pad(w3, ((0, h2p - h2), (0, 0))).astype(jnp.bfloat16)
    return (w1p, b1p, w2p, b2p, w3p, b3)


def reference_forward(x, params):
    w1, b1, w2, b2, w3, b3 = params
    h1 = jnp.maximum(x @ w1 + b1, 0.0)
    h2 = jnp.maximum(h1 @ w2 + b2, 0.0)
    return jax.nn.softmax(h2 @ w3 + b3, axis=1)


if __name__ == "__main__":
    key = jax.random.PRNGKey(0)
    batch, input_size, num_outcomes = 32, 32, 5

    kx, kp = jax.random.split(key)
    x = jax.random.normal(kx, (batch, input_size), jnp.float32)
    params = init_params(kp, input_size, hidden_sizes=(96, 48), num_outcomes=num_outcomes)
    padded_params = pad_params_for_tpu(params)

    # At this demo size the wrapper picks tb=16 -> a 2-step batch grid, which
    # exercises the streaming/pipelined path (real wins appear at B >= thousands).
    out = conversation_outcome_predictor(x, padded_params)
    jax.block_until_ready(out)

    ref = reference_forward(x, params)  # fp32 reference
    assert out.shape == (batch, num_outcomes)
    # bf16 MXU operands vs fp32 reference: loosened tolerance (fp32 accumulation
    # keeps the error well under this).
    assert jnp.allclose(out, ref, atol=2e-2, rtol=2e-2), "mismatch vs reference"
    # Exact fp32 divide -> rows sum to 1 within fp32 rounding.
    assert jnp.allclose(jnp.sum(out, axis=1), 1.0, atol=1e-4), "softmax rows must sum to 1"

    # Exercise the uneven-batch (padding) path too.
    out2 = conversation_outcome_predictor(x[:13], padded_params)
    jax.block_until_ready(out2)
    assert out2.shape == (13, num_outcomes)
    assert jnp.allclose(out2, ref[:13], atol=2e-2, rtol=2e-2), "mismatch on uneven batch"
    assert jnp.allclose(jnp.sum(out2, axis=1), 1.0, atol=1e-4), "softmax rows must sum to 1"

    print("KERNEL_OK")
</pallas_src>

<mosaic_0001>
module attributes {stable_mosaic.version = 11 : i64} {
  func.func @mlp_softmax_kernel(%arg0: i32, %arg1: memref<16x32xbf16, #tpu.memory_space<vmem>>, %arg2: memref<32x128xbf16, #tpu.memory_space<vmem>>, %arg3: memref<1x128xf32, #tpu.memory_space<vmem>>, %arg4: memref<128x128xbf16, #tpu.memory_space<vmem>>, %arg5: memref<1x128xf32, #tpu.memory_space<vmem>>, %arg6: memref<128x5xbf16, #tpu.memory_space<vmem>>, %arg7: memref<1x5xf32, #tpu.memory_space<vmem>>, %arg8: memref<16x5xf32, #tpu.memory_space<vmem>>) attributes {dimension_semantics = [#tpu.dimension_semantics<parallel>], iteration_bounds = array<i64: 2>, scalar_prefetch = 0 : i64, scratch_operands = 0 : i64, tpu.core_type = #tpu.core_type<tc>, window_params = [{transform_indices = @transform_0, window_bounds = array<i64: 16, 32>}, {pipeline_mode = #tpu.pipeline_mode<synchronous>, transform_indices = @transform_1, window_bounds = array<i64: 32, 128>}, {pipeline_mode = #tpu.pipeline_mode<synchronous>, transform_indices = @transform_2, window_bounds = array<i64: 1, 128>}, {pipeline_mode = #tpu.pipeline_mode<synchronous>, transform_indices = @transform_3, window_bounds = array<i64: 128, 128>}, {pipeline_mode = #tpu.pipeline_mode<synchronous>, transform_indices = @transform_4, window_bounds = array<i64: 1, 128>}, {pipeline_mode = #tpu.pipeline_mode<synchronous>, transform_indices = @transform_5, window_bounds = array<i64: 128, 5>}, {pipeline_mode = #tpu.pipeline_mode<synchronous>, transform_indices = @transform_6, window_bounds = array<i64: 1, 5>}, {transform_indices = @transform_7, window_bounds = array<i64: 16, 5>}]} {
    %c0 = arith.constant 0 : index
    %c0_0 = arith.constant 0 : index
    %0 = vector.load %arg1[%c0, %c0_0] : memref<16x32xbf16, #tpu.memory_space<vmem>>, vector<16x32xbf16>
    %c0_1 = arith.constant 0 : index
    %c0_2 = arith.constant 0 : index
    %1 = vector.load %arg2[%c0_1, %c0_2] : memref<32x128xbf16, #tpu.memory_space<vmem>>, vector<32x128xbf16>
    %cst = arith.constant dense<0.000000e+00> : vector<16x128xf32>
    %2 = tpu.matmul %0, %1, %cst {dimension_numbers = #tpu.dot_dimension_numbers<[1], [0], [0], [1], [0, 0, 1, 1], [], []>} : vector<16x32xbf16>, vector<32x128xbf16>, vector<16x128xf32> -> vector<16x128xf32>
    %c0_3 = arith.constant 0 : index
    %c0_4 = arith.constant 0 : index
    %3 = vector.load %arg3[%c0_3, %c0_4] : memref<1x128xf32, #tpu.memory_space<vmem>>, vector<1x128xf32>
    %4 = vector.broadcast %3 : vector<1x128xf32> to vector<16x128xf32>
    %5 = arith.addf %2, %4 : vector<16x128xf32>
    %cst_5 = arith.constant 0.000000e+00 : f32
    %6 = vector.broadcast %cst_5 : f32 to vector<16x128xf32>
    %7 = arith.maximumf %5, %6 : vector<16x128xf32>
    %8 = arith.truncf %7 : vector<16x128xf32> to vector<16x128xbf16>
    %c0_6 = arith.constant 0 : index
    %c0_7 = arith.constant 0 : index
    %9 = vector.load %arg4[%c0_6, %c0_7] : memref<128x128xbf16, #tpu.memory_space<vmem>>, vector<128x128xbf16>
    %cst_8 = arith.constant dense<0.000000e+00> : vector<16x128xf32>
    %10 = tpu.matmul %8, %9, %cst_8 {dimension_numbers = #tpu.dot_dimension_numbers<[1], [0], [0], [1], [0, 0, 1, 1], [], []>} : vector<16x128xbf16>, vector<128x128xbf16>, vector<16x128xf32> -> vector<16x128xf32>
    %c0_9 = arith.constant 0 : index
    %c0_10 = arith.constant 0 : index
    %11 = vector.load %arg5[%c0_9, %c0_10] : memref<1x128xf32, #tpu.memory_space<vmem>>, vector<1x128xf32>
    %12 = vector.broadcast %11 : vector<1x128xf32> to vector<16x128xf32>
    %13 = arith.addf %10, %12 : vector<16x128xf32>
    %cst_11 = arith.constant 0.000000e+00 : f32
    %14 = vector.broadcast %cst_11 : f32 to vector<16x128xf32>
    %15 = arith.maximumf %13, %14 : vector<16x128xf32>
    %16 = arith.truncf %15 : vector<16x128xf32> to vector<16x128xbf16>
    %c0_12 = arith.constant 0 : index
    %c0_13 = arith.constant 0 : index
    %17 = vector.load %arg6[%c0_12, %c0_13] : memref<128x5xbf16, #tpu.memory_space<vmem>>, vector<128x5xbf16>
    %cst_14 = arith.constant dense<0.000000e+00> : vector<16x5xf32>
    %18 = tpu.matmul %16, %17, %cst_14 {dimension_numbers = #tpu.dot_dimension_numbers<[1], [0], [0], [1], [0, 0, 1, 1], [], []>} : vector<16x128xbf16>, vector<128x5xbf16>, vector<16x5xf32> -> vector<16x5xf32>
    %c0_15 = arith.constant 0 : index
    %c0_16 = arith.constant 0 : index
    %19 = vector.load %arg7[%c0_15, %c0_16] : memref<1x5xf32, #tpu.memory_space<vmem>>, vector<1x5xf32>
    %20 = vector.broadcast %19 : vector<1x5xf32> to vector<16x5xf32>
    %21 = arith.addf %18, %20 : vector<16x5xf32>
    %cst_17 = arith.constant dense<0xFF800000> : vector<16xf32>
    %22 = vector.multi_reduction <maximumf>, %21, %cst_17 [1] : vector<16x5xf32> to vector<16xf32>
    %23 = vector.shape_cast %22 : vector<16xf32> to vector<16x1xf32>
    %24 = vector.broadcast %23 : vector<16x1xf32> to vector<16x5xf32>
    %25 = arith.subf %21, %24 : vector<16x5xf32>
    %26 = math.exp %25 : vector<16x5xf32>
    %cst_18 = arith.constant dense<0.000000e+00> : vector<16xf32>
    %27 = vector.multi_reduction <add>, %26, %cst_18 [1] : vector<16x5xf32> to vector<16xf32>
    %28 = vector.shape_cast %27 : vector<16xf32> to vector<16x1xf32>
    %29 = vector.broadcast %28 : vector<16x1xf32> to vector<16x5xf32>
    %30 = arith.divf %26, %29 : vector<16x5xf32>
    %c0_19 = arith.constant 0 : index
    %c0_20 = arith.constant 0 : index
    %31 = vector.load %arg8[%c0_19, %c0_20] : memref<16x5xf32, #tpu.memory_space<vmem>>, vector<16x5xf32>
    tpu.vector_store %arg8[%c0_19, %c0_20], %30 {strides = array<i32>} : memref<16x5xf32, #tpu.memory_space<vmem>>, vector<16x5xf32>,
    return
  }
  func.func @transform_0(%arg0: i32) -> (i32, i32) {
    %c0_i32 = arith.constant 0 : i32
    %c0_i32_0 = arith.constant 0 : i32
    return %arg0, %c0_i32 : i32, i32
  }
  func.func @transform_1(%arg0: i32) -> (i32, i32) {
    %c0_i32 = arith.constant 0 : i32
    %c0_i32_0 = arith.constant 0 : i32
    %c0_i32_1 = arith.constant 0 : i32
    return %c0_i32, %c0_i32_0 : i32, i32
  }
  func.func @transform_2(%arg0: i32) -> (i32, i32) {
    %c0_i32 = arith.constant 0 : i32
    %c0_i32_0 = arith.constant 0 : i32
    %c0_i32_1 = arith.constant 0 : i32
    return %c0_i32, %c0_i32_0 : i32, i32
  }
  func.func @transform_3(%arg0: i32) -> (i32, i32) {
    %c0_i32 = arith.constant 0 : i32
    %c0_i32_0 = arith.constant 0 : i32
    %c0_i32_1 = arith.constant 0 : i32
    return %c0_i32, %c0_i32_0 : i32, i32
  }
  func.func @transform_4(%arg0: i32) -> (i32, i32) {
    %c0_i32 = arith.constant 0 : i32
    %c0_i32_0 = arith.constant 0 : i32
    %c0_i32_1 = arith.constant 0 : i32
    return %c0_i32, %c0_i32_0 : i32, i32
  }
  func.func @transform_5(%arg0: i32) -> (i32, i32) {
    %c0_i32 = arith.constant 0 : i32
    %c0_i32_0 = arith.constant 0 : i32
    %c0_i32_1 = arith.constant 0 : i32
    return %c0_i32, %c0_i32_0 : i32, i32
  }
  func.func @transform_6(%arg0: i32) -> (i32, i32) {
    %c0_i32 = arith.constant 0 : i32
    %c0_i32_0 = arith.constant 0 : i32
    %c0_i32_1 = arith.constant 0 : i32
    return %c0_i32, %c0_i32_0 : i32, i32
  }
  func.func @transform_7(%arg0: i32) -> (i32, i32) {
    %c0_i32 = arith.constant 0 : i32
    %c0_i32_0 = arith.constant 0 : i32
    return %arg0, %c0_i32 : i32, i32
  }
}

</mosaic_0001>

<bundles_post_ra>
// kernel: tpu_custom_call.1
= control target key start
LH: loop header
LB: loop body
LE: loop exit
PB: predicated region body
PF: predicated region fallthrough
CT: control target
= control target key end

     0   :  { %12 = vsyncpa [#allocation3], 0  ;;  %s1295_s0 = inlined_call_operand.hbm [shape: bf16[32,32], index: 0, kind: input, shape index: {}]   ;;  %s1296_s1 = inlined_call_operand.hbm [shape: bf16[32,128], index: 1, kind: input, shape index: {}]   ;;  %s1297_s2 = inlined_call_operand.vmem [shape: f32[1,128], index: 2, kind: input, shape index: {}]   ;;  %s1298_s3 = inlined_call_operand.vmem [shape: bf16[128,128], index: 3, kind: input, shape index: {}]   ;;  %s1299_s4 = inlined_call_operand.vmem [shape: f32[1,128], index: 4, kind: input, shape index: {}]   ;;  %s1300_s5 = inlined_call_operand.vmem [shape: bf16[128,5], index: 5, kind: input, shape index: {}]   ;;  %s1301_s6 = inlined_call_operand.vmem [shape: f32[1,5], index: 6, kind: input, shape index: {}]   ;;  %s1302_s7 = inlined_call_operand.vmem [shape: f32[32,5], index: 7, kind: output, shape index: {}]  }
   0x1   :  { %14 = vsyncpa [#allocation3 + $0x1], 0 }
   0x2   :  { %15 = vsyncpa [#allocation5], 0  ;;  %s1057_s24 = smov 0   ;;  %s1059_s25 = smov 0  }
   0x3   :  { %s1061_s26 = smov 0   ;;  %s1063_s27 = smov 0  }
   0x4 LB: > { %s724_s28 = sadd.s32 4294967295, %s1009_s27   ;;  %p41_p0 = scmp.ne.s32.totalorder %s1001_s25, %s997_s24  ;;  %s1009_s27 = sphi %s1063_s27, %s1318_s27   ;;  %s1005_s26 = sphi %s1061_s26, %s1317_s26   ;;  %s1001_s25 = sphi %s1059_s25, %s1316_s25   ;;  %s997_s24 = sphi %s1057_s24, %s1315_s24  }
   0x5   : > { %p1079_p1 = scmp.eq.s32.totalorder %s724_s28, 0  ;;  %p726_p2 = scmp.ge.s32.totalorder %s1009_s27, 1 }
   0x6   : > { %p204_p3 = scmp.lt.s32.totalorder %s1009_s27, 3  ;;  %s1011_s9 = smov [#allocation4]  }
   0x7   : > { %s1307_s29 = scalar_select %p1079_p1, 1, 0 }
   0x8   : > { %p1087_p4 = por %p1079_p1, %p41_p0  ;;  %p1091_p5 = pnand %p726_p2, %p204_p3 }
   0x9   : > { %s216_s10 = sshll.u32 %s1011_s9, 4  ;;  %s1104_s12 = sadd.s32 1, %s1009_s27   ;;  %s217_s10 = int_to_ptr.vmem [resolvable:$true] %s216_s10 }
   0xa   : > { %s1308_s30 = scalar_select %p1087_p4, 1, 0 }
   0xb   : > { %s1309_s8 = scalar_select %p1091_p5, 1, 0 }
   0xc   : > { %p838_p6 = pneg %p1091_p5  ;;  %s28_s13 = sadd.s32 1, %s1005_s26 }
   0xd   : > { %s25_s14 = ssub.s32 %s1009_s27, %s1104_s12  ;;  %s913_s17 = scalar_lea.hbm %s1296_s1, 256 }
   0xe   : > { %p1099_p7 = pnand %p838_p6, %p1079_p1  ;;  %p914_p8 = scmp.ne.s32.totalorder %s1296_s1, %s913_s17 }
   0xf   : > { %p920_p12 = scmp.lt.u32.totalorder %s913_s17, %s1296_s1 }
  0x10   : > { %p915_p9 = pneg %p1099_p7 }
  0x12   : > { %p916_p10 = pnand %p915_p9, %p914_p8 }
  0x14   : > { %p917_p11 = pneg %p916_p10 }
  0x16   : > { %p922_p13 = pnand %p920_p12, %p917_p11 }
  0x18   : > { %925 = shalt.err (!%p922_p13)
}
  0x19   : > { %s926_s22 = scalar_lea.vmem %s217_s10, 256  ;;  %p934_p6 = scmp.lt.s32.totalorder %s217_s10, %s217_s10 }
  0x1a   : > { %p927_p0 = scmp.ne.s32.totalorder %s217_s10, %s926_s22  ;;  %p935_p1 = scmp.lt.s32.totalorder %s926_s22, %s926_s22 }
  0x1c   : > { %p929_p2 = pnand %p927_p0, %p915_p9  ;;  %p936_p4 = por %p935_p1, %p934_p6 }
  0x1e   : > { %p930_p3 = pneg %p929_p2 }
  0x20   : > { %p937_p5 = pnand %p936_p4, %p930_p3 }
  0x22   : > { %940 = shalt.err (!%p937_p5)
}
  0x23   : > { %s1012_s23 = smov 64   ;;  %s1013_s24 = smov 4  }
  0x24   : > { %841 = dma.hbm_to_vmem [thread:$0]  (!%p1099_p7), %s1296_s1, 256, %s217_s10, [#allocation5], %s1012_s23, %s1012_s23, %s1013_s24  }
  0x25   : > { %p26_p1 = scmp.eq.s32.totalorder %s25_s14, 0  ;;  %p35_p4 = scmp.ne.s32.totalorder %s1005_s26, %s1001_s25 }
  0x26   : > { %p36_p5 = scmp.eq.s32.totalorder %s1009_s27, 0  ;;  %p847_p8 = scmp.lt.s32.totalorder %s1009_s27, 2 }
  0x27   : > { %s1133_s16 = scalar_select %p26_p1, %s1005_s26, %s28_s13  }
  0x28   : > { %p37_p9 = por %p36_p5, %p35_p4  ;;  %s245_s17 = sand.u32 1, %s1005_s26  }
  0x29   : > { %s729_s18 = sshll.u32 %s245_s17, 3  ;;  %s762_s19 = sshll.u32 %s1009_s27, 7 }
  0x2a   : > { %s1140_s11 = scalar_lea.hbm %s1295_s0, %s762_s19  ;;  %s249_s10 = scalar_lea.vmem [#allocation2], %s729_s18 }
  0x2b   : > { %s256_s14 = sshll.u32 %s249_s10, 4  ;;  %p1144_p7 = pnand %p847_p8, %p37_p9  ;;  %s1142_s14 = int_to_ptr.vmem [resolvable:$true] %s256_s14 }
  0x2c   : > { %s1148_s22 = scalar_lea.sflag [#allocation3], %s245_s17  ;;  %s941_s9 = scalar_lea.hbm %s1140_s11, 128 }
  0x2d   : > { %p942_p10 = scmp.ne.s32.totalorder %s1140_s11, %s941_s9  ;;  %p943_p11 = pneg %p1144_p7 }
  0x2e   : > { %s946_s19 = scalar_lea.hbm %s1295_s0, 256  ;;  %p947_p0 = scmp.lt.u32.totalorder %s1140_s11, %s1295_s0 }
  0x2f   : > { %p944_p12 = pnand %p943_p11, %p942_p10  ;;  %p948_p2 = scmp.lt.u32.totalorder %s946_s19, %s941_s9 }
  0x30   : > { %p950_p6 = scmp.lt.u32.totalorder %s941_s9, %s1140_s11 }
  0x31   : > { %p945_p13 = pneg %p944_p12  ;;  %p949_p3 = por %p948_p2, %p947_p0 }
  0x33   : > { %p951_p1 = por %p950_p6, %p949_p3 }
  0x35   : > { %p952_p4 = pnand %p951_p1, %p945_p13 }
  0x37   : > { %955 = shalt.err (!%p952_p4)
}
  0x38   : > { %s956_s17 = scalar_lea.vmem %s1142_s14, 128  ;;  %s1014_s10 = smov [#allocation2]  }
  0x39   : > { %p957_p5 = scmp.ne.s32.totalorder %s1142_s14, %s956_s17  ;;  %s961_s15 = sshll.u32 %s1014_s10, 4  ;;  %s962_s15 = int_to_ptr.vmem [resolvable:$false] %s961_s15 }
  0x3a   : > { %s963_s18 = scalar_lea.vmem %s962_s15, 256  ;;  %p964_p10 = scmp.lt.s32.totalorder %s1142_s14, %s962_s15 }
  0x3b   : > { %p959_p8 = pnand %p957_p5, %p943_p11  ;;  %p965_p12 = scmp.lt.s32.totalorder %s963_s18, %s956_s17 }
  0x3d   : > { %p960_p9 = pneg %p959_p8  ;;  %p966_p0 = por %p965_p12, %p964_p10 }
  0x3f   : > { %p967_p2 = pnand %p966_p0, %p960_p9 }
  0x41   : > { %970 = shalt.err (!%p967_p2)
}
  0x42   : > { %845 = dma.hbm_to_vmem [thread:$0]  (!%p1144_p7), %s1140_s11, 128, %s1142_s14, %s1148_s22, %s1012_s23, %s1012_s23, %s1013_s24  }
  0x43   : > { %p1312_p11 = scmp.ne.s32.totalorder %s1309_s8, 0 }
  0x44   : > { %s270_s9 = sand.u32 (!%p1312_p11), 1, %s1001_s25   ;;  %p1313_p13 = scmp.ne.s32.totalorder (!%p1312_p11), %s1308_s30, 0 }
  0x45   : > { %268 = sbr.rel (%p1312_p11) target bundleno = 1063 (0x427), region = 48  ;;  %s733_s19 = sshll.u32 (!%p1312_p11), %s270_s9, 3 }
  0x46   : > { %s271_s20 = scalar_lea.sflag (!%p1312_p11), [#allocation3], %s270_s9  ;;  %s274_s21 = scalar_lea.vmem (!%p1312_p11), [#allocation2], %s733_s19 }
  0x4c   : > { %988 = dma.done.wait (%p1313_p13), %s271_s20, 128  }
  0x4d   : > { %990 = vsyncadd (%p1313_p13), %s271_s20, 4294967168  ;;  %p1314_p3 = scmp.ne.s32.totalorder %s1307_s29, 0 }
  0x4f   : > { %992 = dma.done.wait (%p1314_p3), [#allocation5], 256  }
  0x50   : > { %994 = vsyncadd (%p1314_p3), [#allocation5], 4294967040  ;;  %v1015_v0 = vmov 0.0   ;;  %vm1016_vm0 = vmmov 0   ;;  %v886_v1 = vld [vmem:[#allocation4] sm:$0xff]   ;;  %v887_v2 = vld [vmem:[#allocation4 + $0x8] sm:$0xff]  }
  0x51   : > { %784 = vmatprep.subr.bf16.mxu0 %v1015_v0  ;;  %788 = vmatprep.mubr.msk.bf16.mxu0 %vm1016_vm0, %v1015_v0  ;;  %v889_v3 = vld [vmem:[%s1298_s3] sm:$0xff]   ;;  %v890_v5 = vld [vmem:[%s1298_s3 + $0x8] sm:$0xff]   ;;  %vm347_vm1 = vcmask 261120   ;;  %v891_v6 = vld [vmem:[%s1298_s3 + $0x10] sm:$0xff]   ;;  %vm622_vm2 = vcmask 39936   ;;  %s735_s24 = sshll.u32 %s724_s28, 1 }
  0x52   : > { %792 = vmatprep.subr.bf16.mxu1 %v1015_v0  ;;  %808 = vmatprep.mubr.msk.bf16.mxu1 %vm1016_vm0, %v1015_v0  ;;  %v888_v4 = vld [vmem:[%s274_s21] sm:$0xff]   ;;  %v892_v7 = vld [vmem:[%s1298_s3 + $0x18] sm:$0xff]   ;;  %v895_v10 = vld [vmem:[%s1298_s3 + $0x30] sm:$0xff]   ;;  %p311_p7 = scmp.lt.s32.totalorder %s735_s24, 3 }
  0x53   : > { %785 = vmatpush3.bf16.msra.mxu0 %v886_v1  ;;  %793 = vmatpush3.bf16.msra.mxu1 %v889_v3  ;;  %v893_v8 = vld [vmem:[%s1298_s3 + $0x20] sm:$0xff]   ;;  %v894_v9 = vld [vmem:[%s1298_s3 + $0x28] sm:$0xff]   ;;  %v896_v11 = vld [vmem:[%s1298_s3 + $0x38] sm:$0xff]  }
  0x54   : > { %786 = vmatprep.subr.bf16.mxu0 %v1015_v0  ;;  %794 = vmatprep.subr.bf16.mxu1 %v1015_v0  ;;  %v897_v12 = vld [vmem:[%s1300_s5] sm:$0xff]   ;;  %v898_v13 = vld [vmem:[%s1300_s5 + $0x8] sm:$0xff]   ;;  %v899_v14 = vld [vmem:[%s1300_s5 + $0x10] sm:$0xff]   ;;  %s1320_s24 = smov (!%p311_p7, %s735_s24), 3 }
  0x55   : > { %v900_v15 = vld [vmem:[%s1300_s5 + $0x18] sm:$0xff]   ;;  %v901_v16 = vld [vmem:[%s1300_s5 + $0x20] sm:$0xff]   ;;  %v902_v17 = vld [vmem:[%s1300_s5 + $0x28] sm:$0xff]   ;;  %s736_s11 = sshll.u32 %s1320_s24, 3 }
  0x56   : > { %v737_v18 = vld [vmem:[%s1297_s2] ss:$0 sm:$0xff]  ;;  %v903_v28 = vld [vmem:[%s1300_s5 + $0x30] sm:$0xff]   ;;  %v904_v29 = vld [vmem:[%s1300_s5 + $0x38] sm:$0xff]   ;;  %s314_s22 = scalar_lea.vmem %s1302_s7, %s736_s11 }
  0x57   : > { %787 = vmatpush3.bf16.msra.mxu0 %v887_v2  ;;  %795 = vmatpush3.bf16.msra.mxu1 %v890_v5  ;;  %v742_v30 = vld [vmem:[%s1299_s4] ss:$0 sm:$0xff] }
  0x58   : > { %812 = vmatprep.subr.bf16.mxu0 %v1015_v0  ;;  %796 = vmatprep.subr.bf16.mxu1 %v1015_v0  ;;  %v751_v40 = vld [vmem:[%s1301_s6] ss:$0 sm:$0xff] }
  0x5a   : > { %789 = vmatmul.mubr.msk.bf16.vlgmr.msra.gmra.mrb[0].mxu0 %vm347_vm1, %v888_v4 }
  0x5b   : > { %828 = vmatprep.mubr.msk.bf16.mxu0 %vm1016_vm0, %v1015_v0  ;;  %797 = vmatpush3.bf16.msra.mxu1 %v891_v6 }
  0x5c   : > { %798 = vmatprep.subr.bf16.mxu1 %v1015_v0  ;;  %813 = vmatpush3.bf16.msra.mxu0 %v897_v12 }
  0x5d   : > { %814 = vmatprep.subr.bf16.mxu0 %v1015_v0 }
  0x5f   : > { %799 = vmatpush3.bf16.msra.mxu1 %v892_v7 }
  0x60   : > { %800 = vmatprep.subr.bf16.mxu1 %v1015_v0  ;;  %815 = vmatpush3.bf16.msra.mxu0 %v898_v13 }
  0x61   : > { %816 = vmatprep.subr.bf16.mxu0 %v1015_v0 }
  0x63   : > { %801 = vmatpush3.bf16.msra.mxu1 %v893_v8 }
  0x64   : > { %802 = vmatprep.subr.bf16.mxu1 %v1015_v0  ;;  %817 = vmatpush3.bf16.msra.mxu0 %v899_v14 }
  0x65   : > { %818 = vmatprep.subr.bf16.mxu0 %v1015_v0 }
  0x67   : > { %803 = vmatpush3.bf16.msra.mxu1 %v894_v9 }
  0x68   : > { %804 = vmatprep.subr.bf16.mxu1 %v1015_v0  ;;  %819 = vmatpush3.bf16.msra.mxu0 %v900_v15 }
  0x69   : > { %820 = vmatprep.subr.bf16.mxu0 %v1015_v0 }
  0x6b   : > { %805 = vmatpush3.bf16.msra.mxu1 %v895_v10 }
  0x6c   : > { %806 = vmatprep.subr.bf16.mxu1 %v1015_v0  ;;  %821 = vmatpush3.bf16.msra.mxu0 %v901_v16 }
  0x6d   : > { %822 = vmatprep.subr.bf16.mxu0 %v1015_v0 }
  0x6f   : > { %807 = vmatpush3.bf16.msra.mxu1 %v896_v11 }
  0x70   : > { %823 = vmatpush3.bf16.msra.mxu0 %v902_v17 }
  0x71   : > { %824 = vmatprep.subr.bf16.mxu0 %v1015_v0 }
  0x74   : > { %825 = vmatpush3.bf16.msra.mxu0 %v903_v28 }
  0x75   : > { %826 = vmatprep.subr.bf16.mxu0 %v1015_v0 }
  0x78   : > { %827 = vmatpush3.bf16.msra.mxu0 %v904_v29 }
 0x12d   : > { %v385_v19 = vpop.f32.mrb[0].mxu0 }
 0x12e   : > { %v386_v20 = vadd.f32 %v737_v18, %v385_v19  ;;  %v790_v21 = vpop.f32.mrb[1].mxu0 }
 0x12f   : > { %v388_v22 = vpop.f32.mrb[2].mxu0 }
 0x130   : > { %v389_v23 = vadd.f32 %v737_v18, %v388_v22  ;;  %v791_v24 = vpop.f32.mrb[3].mxu0  ;;  %v392_v25 = vmax.f32 %v386_v20, 0.0 }
 0x132   : > { %v393_v26 = vmax.f32 %v389_v23, 0.0 }
 0x134   : > { %v394_v27 = vpack.c.bf16 %v393_v26, %v392_v25 }
 0x136   : > { %809 = vmatmul.mubr.bf16.vlgmr.msra.gmra.mrb[0].mxu1 %v394_v27 }
 0x209   : > { %v500_v31 = vpop.f32.mrb[0].mxu1 }
 0x20a   : > { %v501_v32 = vadd.f32 %v742_v30, %v500_v31  ;;  %v810_v33 = vpop.f32.mrb[1].mxu1 }
 0x20b   : > { %v503_v34 = vpop.f32.mrb[2].mxu1 }
 0x20c   : > { %v504_v35 = vadd.f32 %v742_v30, %v503_v34  ;;  %v811_v36 = vpop.f32.mrb[3].mxu1  ;;  %v507_v37 = vmax.f32 %v501_v32, 0.0 }
 0x20e   : > { %v508_v38 = vmax.f32 %v504_v35, 0.0 }
 0x210   : > { %v509_v39 = vpack.c.bf16 %v508_v38, %v507_v37 }
 0x212   : > { %829 = vmatmul.mubr.bf16.vlgmr.msra.gmra.mrb[4].mxu0 %v509_v39 }
 0x2e5   : > { %v615_v41 = vpop.f32.mrb[4].mxu0 }
 0x2e6   : > { %v616_v42 = vadd.f32 %v751_v40, %v615_v41  ;;  %v830_v43 = vpop.f32.mrb[5].mxu0 }
 0x2e7   : > { %v618_v44 = vpop.f32.mrb[6].mxu0 }
 0x2e8   : > { %v619_v45 = vadd.f32 %v751_v40, %v618_v44  ;;  %v831_v46 = vpop.f32.mrb[7].mxu0  ;;  %v623_v47 = vsel %vm622_vm2, %v616_v42, -inf }
 0x2e9   : > { %624 = vmax.xlane.f32.xlu0 %v623_v47 }
 0x2ea   : > { %v626_v48 = vsel %vm622_vm2, %v619_v45, -inf }
 0x2ed   : > { %627 = vmax.xlane.f32.xlu0 %v626_v48 }
 0x376   : > { %v625_v49 = vpop.xlane.xlu0 %624 }
 0x377   : > { %v629_v50 = vsub.f32 %v616_v42, %v625_v49 }
 0x379   : > { %v631_v51 = vmul.f32 1.442695, %v629_v50 }
 0x37a   : > { %v628_v52 = vpop.xlane.xlu0 %627 }
 0x37b   : > { %905 = vpow2.f32 %v631_v51  ;;  %v630_v53 = vsub.f32 %v619_v45, %v628_v52 }
 0x37d   : > { %v633_v54 = vmul.f32 1.442695, %v630_v53 }
 0x37f   : > { %907 = vpow2.f32 %v633_v54 }
 0x385   : > { %v906_v55 = vpop.eup %905 }
 0x386   : > { %v635_v56 = vsel %vm622_vm2, %v906_v55, 0.0 }
 0x387   : > { %636 = vadd.xlane.f32.xlu1 %v635_v56 }
 0x389   : > { %v908_v57 = vpop.eup %907 }
 0x38a   : > { %v638_v58 = vsel %vm622_vm2, %v908_v57, 0.0 }
 0x38b   : > { %639 = vadd.xlane.f32.xlu1 %v638_v58 }
 0x414   : > { %v637_v59 = vpop.xlane.xlu1 %636 }
 0x415   : > { %909 = vrcp.f32 %v637_v59 }
 0x418   : > { %v640_v60 = vpop.xlane.xlu1 %639 }
 0x419   : > { %911 = vrcp.f32 %v640_v60 }
 0x41f   : > { %v910_v61 = vpop.eup %909 }
 0x420   : > { %v642_v62 = vmul.f32 %v910_v61, %v906_v55 }
 0x422   : > { %645 = vst.msk [vmem:[%s314_s22] sm:$0xff] %vm622_vm2, %v642_v62 }
 0x423   : > { %v912_v63 = vpop.eup %911 }
 0x424   : > { %v644_v0 = vmul.f32 %v912_v63, %v908_v57 }
 0x426   : > { %646 = vst.msk [vmem:[%s314_s22 + $0x8] sm:$0xff] %vm622_vm2, %v644_v0 }
 0x427 PF: > { %p18_p6 = scmp.ge.s32.totalorder %s1104_s12, 4   ;;  %s1315_s24 = smov %s1001_s25 }
 0x428   : > { %s1316_s25 = smov %s1005_s26  ;;  %s1317_s26 = smov %s1133_s16 }
 0x429   : > { %s1318_s27 = smov %s1104_s12  ;;  %20 = sbr.rel (!%p18_p6) target bundleno = 4 (0x4), region = 92 }
 0x430   :  { %669 = vsyncpa [#allocation3], 1 }
 0x431   :  { %671 = vsyncpa [#allocation3 + $0x1], 1 }
 0x432   :  { %672 = vsyncpa [#allocation5], 1 }

</bundles_post_ra>
